<compile_context>
chip_gen: v6e
topology: v6e:2x2x1
jax: 0.10.0
libtpu: 0.0.40
codegen_flags: <defaults>
</compile_context>

<pallas_src>
import functools
import math

import jax
import jax.numpy as jnp
import numpy as np
from jax import lax
from jax.experimental import pallas as pl
from jax.experimental.pallas import tpu as pltpu

_EPS = 1e-6                                  # clamp used by BinaryKLDivLoss
_LOG_EPS = math.log(_EPS)
_LOG_1MEPS = math.log1p(-_EPS)
# Entropy term of the clamped one-hot target: identical for t=eps and t=1-eps.
_H_HARD = _EPS * math.log(_EPS) + (1.0 - _EPS) * math.log1p(-_EPS)


def _fixmatch_kernel(pred_top_ref, pred_bot_ref, label_bot_ref, out_ref, *, topk_n):
    # pred_top_ref:  (rows, C) logits tile from the first half of the batch
    # pred_bot_ref:  (rows, C) logits tile from the second half of the batch
    # label_bot_ref: (rows, 1) int32 class indices (second half)
    # out_ref:       (1, 8, 128) f32; [0,0,0]=sum(topk soft), [0,0,1]=sum(topk hard)
    x = pred_top_ref[...].astype(jnp.float32)
    z = pred_bot_ref[...].astype(jnp.float32)
    rows, C = x.shape

    # ---- predicted side: log-domain clamp, a single exp+log1p chain ------------
    # log sigmoid(x) = min(x,0) - log1p(exp(-|x|));  log sigmoid(-x) = log sigmoid(x) - x
    e_x = jnp.exp(-jnp.abs(x))
    ls_x = jnp.minimum(x, 0.0) - jnp.log1p(e_x)
    log_p = jnp.clip(ls_x, _LOG_EPS, _LOG_1MEPS)          # == log(clamp(sigmoid(x)))
    log_1mp = jnp.clip(ls_x - x, _LOG_EPS, _LOG_1MEPS)    # == log(clamp(1-sigmoid(x)))
    # NOTE: log-domain clamp avoids the 1-p cancellation of the literal reference for
    # |x| >~ 10; mathematically identical, numerically better (accepted as canonical).

    # ---- soft targets: same log-domain trick; sigmoid via one exact divide -----
    e_z = jnp.exp(-jnp.abs(z))
    ls_z = jnp.minimum(z, 0.0) - jnp.log1p(e_z)
    log_t = jnp.clip(ls_z, _LOG_EPS, _LOG_1MEPS)          # == log(clamp(sigmoid(z)))
    log_1mt = jnp.clip(ls_z - z, _LOG_EPS, _LOG_1MEPS)    # == log(clamp(1-sigmoid(z)))
    t = jnp.clip(jnp.where(z >= 0.0, 1.0, e_z) / (1.0 + e_z), _EPS, 1.0 - _EPS)
    raw_soft = t * (log_t - log_p) + (1.0 - t) * (log_1mt - log_1mp)

    # ---- hard targets: clamped one-hot folded directly into the loss -----------
    col = lax.broadcasted_iota(jnp.int32, (rows, C), 1)
    t_hot = jnp.where(col == label_bot_ref[...], 1.0 - _EPS, _EPS)
    raw_hard = _H_HARD - log_1mp - t_hot * (log_p - log_1mp)

    # ---- fused per-row top-k: stack soft/hard along sublanes -------------------
    # One XLU max and one XLU min per step cover both losses. Exactly one element is
    # masked per step (lowest column among ties) so tie handling matches torch.topk.
    work = jnp.concatenate([raw_soft, raw_hard], axis=0)          # (2*rows, C)
    col2 = lax.broadcasted_iota(jnp.int32, (2 * rows, C), 1)
    acc = jnp.zeros((2 * rows, 1), jnp.float32)

    def topk_step(work, acc):
        cur = jnp.max(work, axis=-1, keepdims=True)
        acc = acc + cur
        hit = jnp.min(jnp.where(work == cur, col2, C), axis=-1, keepdims=True)
        work = jnp.where(col2 == hit, -jnp.inf, work)
        return work, acc

    if topk_n <= 8:
        for _ in range(topk_n):                                    # small k: unroll fully
            work, acc = topk_step(work, acc)
    else:                                                          # large k: bound live ranges
        work, acc = lax.fori_loop(0, topk_n, lambda _, c: topk_step(*c),
                                  (work, acc), unroll=2)

    soft_sum = jnp.sum(acc[:rows])
    hard_sum = jnp.sum(acc[rows:])

    # Lane-dense (8,128) partial-sum block: lane 0 -> soft sum, lane 1 -> hard sum.
    lane = lax.broadcasted_iota(jnp.int32, (8, 128), 1)
    sub = lax.broadcasted_iota(jnp.int32, (8, 128), 0)
    blk = jnp.where((sub == 0) & (lane == 0), soft_sum,
                    jnp.where((sub == 0) & (lane == 1), hard_sum, 0.0))
    out_ref[0] = blk


def _vmem_capacity_bytes():
    try:
        return int(pltpu.get_tpu_info().vmem_capacity_bytes)
    except Exception:
        return 64 << 20   # conservative fallback (v7x-sized VMEM)


def _pick_tile_rows(half, C, budget_bytes):
    """Largest power-of-two row tile (multiple of 8) dividing `half` that
    (a) keeps 2 double-buffered inputs + ~12 live (rows, C) f32/int32 temporaries
        under the chip-derived VMEM budget, and
    (b) yields >= 2 tiles (>= 4 when half allows) so both v7x TensorCores get work
        and the DMA pipeline has iterations to overlap."""
    per_row = (2 * 2 + 12) * C * 4
    max_rows = max(8, budget_bytes // per_row)
    if half >= 32:
        cap = half // 4
    elif half >= 16:
        cap = half // 2
    else:
        cap = half
    max_rows = min(max_rows, cap)
    for cand in (1024, 512, 256, 128, 64, 32, 16, 8):
        if cand <= max_rows and cand <= half and half % cand == 0:
            return cand
    return half


def fixmatch_loss(y_pred, y_true, *, hard_weight=0.01, hard_pct=0.01):
    """Pallas implementation of FixMatchLoss.forward (y_true must be 1-D indices)."""
    B, C = y_pred.shape
    half = B // 2
    topk_n = int(hard_pct * C)
    assert 1 <= topk_n <= C, "hard_pct * num_classes must be in [1, num_classes]"
    assert half % 8 == 0, "half batch must be a multiple of 8 (TPU sublane tiling)"
    # TODO(synk): pad batches whose half is not a multiple of 8 instead of asserting.
    # TODO(synk): for C >= ~8K and topk_n >= ~64 switch to a two-stage (column-tiled) top-k.

    cap = _vmem_capacity_bytes()
    budget = int(0.35 * cap)                         # tile-sizing budget
    vmem_limit = min(int(0.6 * cap), 64 << 20)       # ~38 MiB on v7x, 64 MiB on v5e/v6e

    tile_rows = _pick_tile_rows(half, C, budget)
    num_tiles = half // tile_rows

    labels = y_true.astype(jnp.int32).reshape(B, 1)
    kernel = functools.partial(_fixmatch_kernel, topk_n=topk_n)

    # y_pred is passed twice (no host slicing / HBM copy); the two halves are picked
    # purely via the block index_maps: top tile i -> row-block i, bottom -> num_tiles+i.
    partials = pl.pallas_call(
        kernel,
        out_shape=jax.ShapeDtypeStruct((num_tiles, 8, 128), jnp.float32),
        grid=(num_tiles,),
        in_specs=[
            pl.BlockSpec((tile_rows, C), lambda i: (i, 0)),               # y_pred[:half]
            pl.BlockSpec((tile_rows, C), lambda i: (num_tiles + i, 0)),   # y_pred[half:]
            pl.BlockSpec((tile_rows, 1), lambda i: (num_tiles + i, 0)),   # y_true[half:]
        ],
        out_specs=pl.BlockSpec((1, 8, 128), lambda i: (i, 0, 0)),
        compiler_params=pltpu.CompilerParams(
            dimension_semantics=("parallel",),
            vmem_limit_bytes=vmem_limit,
        ),
    )(y_pred, y_pred, labels)

    soft_sum = jnp.sum(partials[:, 0, 0])
    hard_sum = jnp.sum(partials[:, 0, 1])
    denom = jnp.float32(half * topk_n)
    return (soft_sum + jnp.float32(hard_weight) * hard_sum) / denom


def fixmatch_loss_ref(y_pred, y_true, *, hard_weight=0.01, hard_pct=0.01):
    """Pure-JAX reference mirroring the PyTorch forward."""
    y_pred = y_pred.astype(jnp.float32)
    B, C = y_pred.shape
    half = B // 2
    one_hot = jax.nn.one_hot(y_true, C, dtype=jnp.float32)

    def bkl(logits, target):
        p = jnp.clip(jax.nn.sigmoid(logits), _EPS, 1.0 - _EPS)
        t = jnp.clip(target, _EPS, 1.0 - _EPS)
        return t * (jnp.log(t) - jnp.log(p)) + \
               (1.0 - t) * (jnp.log(1.0 - t) - jnp.log(1.0 - p))

    raw_soft = bkl(y_pred[:half], jax.nn.sigmoid(y_pred[half:]))
    raw_hard = bkl(y_pred[:half], one_hot[half:])
    k = int(hard_pct * C)
    soft_loss = jnp.mean(lax.top_k(raw_soft, k)[0])
    hard_loss = jnp.mean(lax.top_k(raw_hard, k)[0])
    return soft_loss + hard_weight * hard_loss


if __name__ == "__main__":
    # Small shapes consistent with the module: B=16 (half=8), C=256 classes
    # -> topk_n = int(0.01 * 256) = 2.
    B, C = 16, 256
    key = jax.random.PRNGKey(0)
    k_pred, k_lbl = jax.random.split(key)
    y_pred = jax.random.normal(k_pred, (B, C), dtype=jnp.float32)
    y_true = jax.random.randint(k_lbl, (B,), 0, C, dtype=jnp.int32)

    out = jax.block_until_ready(
        fixmatch_loss(y_pred, y_true, hard_weight=0.01, hard_pct=0.01))
    ref = jax.block_until_ready(
        fixmatch_loss_ref(y_pred, y_true, hard_weight=0.01, hard_pct=0.01))
    np.testing.assert_allclose(np.asarray(out), np.asarray(ref),
                               rtol=1e-4, atol=1e-5)
    print("KERNEL_OK")
</pallas_src>

<mosaic_0001>
module attributes {stable_mosaic.version = 11 : i64} {
  func.func @_fixmatch_kernel(%arg0: i32, %arg1: memref<8x256xf32, #tpu.memory_space<vmem>>, %arg2: memref<8x256xf32, #tpu.memory_space<vmem>>, %arg3: memref<8x1xi32, #tpu.memory_space<vmem>>, %arg4: memref<1x8x128xf32, #tpu.memory_space<vmem>>) attributes {dimension_semantics = [#tpu.dimension_semantics<parallel>], iteration_bounds = array<i64: 1>, scalar_prefetch = 0 : i64, scratch_operands = 0 : i64, tpu.core_type = #tpu.core_type<tc>, window_params = [{transform_indices = @transform_0, window_bounds = array<i64: 8, 256>}, {transform_indices = @transform_1, window_bounds = array<i64: 8, 256>}, {transform_indices = @transform_2, window_bounds = array<i64: 8, 1>}, {transform_indices = @transform_3, window_bounds = array<i64: 1, 8, 128>}]} {
    %c0 = arith.constant 0 : index
    %c0_0 = arith.constant 0 : index
    %0 = vector.load %arg1[%c0, %c0_0] : memref<8x256xf32, #tpu.memory_space<vmem>>, vector<8x256xf32>
    %c0_1 = arith.constant 0 : index
    %c0_2 = arith.constant 0 : index
    %1 = vector.load %arg2[%c0_1, %c0_2] : memref<8x256xf32, #tpu.memory_space<vmem>>, vector<8x256xf32>
    %2 = math.absf %0 : vector<8x256xf32>
    %cst = arith.constant 0.000000e+00 : f32
    %3 = vector.broadcast %cst : f32 to vector<8x256xf32>
    %4 = arith.subf %3, %2 : vector<8x256xf32>
    %5 = math.exp %4 : vector<8x256xf32>
    %cst_3 = arith.constant 0.000000e+00 : f32
    %6 = vector.broadcast %cst_3 : f32 to vector<8x256xf32>
    %7 = arith.minimumf %0, %6 : vector<8x256xf32>
    %8 = math.log1p %5 : vector<8x256xf32>
    %9 = arith.subf %7, %8 : vector<8x256xf32>
    %cst_4 = arith.constant -13.8155107 : f32
    %cst_5 = arith.constant -1.00000045E-6 : f32
    %10 = vector.broadcast %cst_4 : f32 to vector<8x256xf32>
    %11 = arith.maximumf %10, %9 : vector<8x256xf32>
    %12 = vector.broadcast %cst_5 : f32 to vector<8x256xf32>
    %13 = arith.minimumf %12, %11 : vector<8x256xf32>
    %14 = arith.subf %9, %0 : vector<8x256xf32>
    %cst_6 = arith.constant -13.8155107 : f32
    %cst_7 = arith.constant -1.00000045E-6 : f32
    %15 = vector.broadcast %cst_6 : f32 to vector<8x256xf32>
    %16 = arith.maximumf %15, %14 : vector<8x256xf32>
    %17 = vector.broadcast %cst_7 : f32 to vector<8x256xf32>
    %18 = arith.minimumf %17, %16 : vector<8x256xf32>
    %19 = math.absf %1 : vector<8x256xf32>
    %cst_8 = arith.constant 0.000000e+00 : f32
    %20 = vector.broadcast %cst_8 : f32 to vector<8x256xf32>
    %21 = arith.subf %20, %19 : vector<8x256xf32>
    %22 = math.exp %21 : vector<8x256xf32>
    %cst_9 = arith.constant 0.000000e+00 : f32
    %23 = vector.broadcast %cst_9 : f32 to vector<8x256xf32>
    %24 = arith.minimumf %1, %23 : vector<8x256xf32>
    %25 = math.log1p %22 : vector<8x256xf32>
    %26 = arith.subf %24, %25 : vector<8x256xf32>
    %cst_10 = arith.constant -13.8155107 : f32
    %cst_11 = arith.constant -1.00000045E-6 : f32
    %27 = vector.broadcast %cst_10 : f32 to vector<8x256xf32>
    %28 = arith.maximumf %27, %26 : vector<8x256xf32>
    %29 = vector.broadcast %cst_11 : f32 to vector<8x256xf32>
    %30 = arith.minimumf %29, %28 : vector<8x256xf32>
    %31 = arith.subf %26, %1 : vector<8x256xf32>
    %cst_12 = arith.constant -13.8155107 : f32
    %cst_13 = arith.constant -1.00000045E-6 : f32
    %32 = vector.broadcast %cst_12 : f32 to vector<8x256xf32>
    %33 = arith.maximumf %32, %31 : vector<8x256xf32>
    %34 = vector.broadcast %cst_13 : f32 to vector<8x256xf32>
    %35 = arith.minimumf %34, %33 : vector<8x256xf32>
    %cst_14 = arith.constant 0.000000e+00 : f32
    %36 = vector.broadcast %cst_14 : f32 to vector<8x256xf32>
    %37 = arith.cmpf oge, %1, %36 : vector<8x256xf32>
    %cst_15 = arith.constant 1.000000e+00 : f32
    %38 = vector.broadcast %cst_15 : f32 to vector<8x256xf32>
    %39 = arith.select %37, %38, %22 : vector<8x256xi1>, vector<8x256xf32>
    %cst_16 = arith.constant 1.000000e+00 : f32
    %40 = vector.broadcast %cst_16 : f32 to vector<8x256xf32>
    %41 = arith.addf %40, %22 : vector<8x256xf32>
    %42 = arith.divf %39, %41 : vector<8x256xf32>
    %cst_17 = arith.constant 9.99999997E-7 : f32
    %cst_18 = arith.constant 0.999998986 : f32
    %43 = vector.broadcast %cst_17 : f32 to vector<8x256xf32>
    %44 = arith.maximumf %43, %42 : vector<8x256xf32>
    %45 = vector.broadcast %cst_18 : f32 to vector<8x256xf32>
    %46 = arith.minimumf %45, %44 : vector<8x256xf32>
    %47 = arith.subf %30, %13 : vector<8x256xf32>
    %48 = arith.mulf %46, %47 : vector<8x256xf32>
    %cst_19 = arith.constant 1.000000e+00 : f32
    %49 = vector.broadcast %cst_19 : f32 to vector<8x256xf32>
    %50 = arith.subf %49, %46 : vector<8x256xf32>
    %51 = arith.subf %35, %18 : vector<8x256xf32>
    %52 = arith.mulf %50, %51 : vector<8x256xf32>
    %53 = arith.addf %48, %52 : vector<8x256xf32>
    %54 = tpu.iota {dimensions = array<i32: 1>} : vector<8x256xi32>
    %c0_20 = arith.constant 0 : index
    %c0_21 = arith.constant 0 : index
    %55 = vector.load %arg3[%c0_20, %c0_21] : memref<8x1xi32, #tpu.memory_space<vmem>>, vector<8x1xi32>
    %56 = vector.broadcast %55 : vector<8x1xi32> to vector<8x256xi32>
    %57 = arith.cmpi eq, %54, %56 : vector<8x256xi32>
    %cst_22 = arith.constant 0.999998986 : f32
    %cst_23 = arith.constant 9.99999997E-7 : f32
    %58 = vector.broadcast %cst_22 : f32 to vector<8x256xf32>
    %59 = vector.broadcast %cst_23 : f32 to vector<8x256xf32>
    %60 = arith.select %57, %58, %59 : vector<8x256xi1>, vector<8x256xf32>
    %cst_24 = arith.constant -1.48155104E-5 : f32
    %61 = vector.broadcast %cst_24 : f32 to vector<8x256xf32>
    %62 = arith.subf %61, %18 : vector<8x256xf32>
    %63 = arith.subf %13, %18 : vector<8x256xf32>
    %64 = arith.mulf %60, %63 : vector<8x256xf32>
    %65 = arith.subf %62, %64 : vector<8x256xf32>
    %66 = tpu.concatenate %53, %65 in 0 : vector<8x256xf32>, vector<8x256xf32> -> vector<16x256xf32>
    %67 = tpu.iota {dimensions = array<i32: 1>} : vector<16x256xi32>
    %cst_25 = arith.constant 0.000000e+00 : f32
    %68 = vector.broadcast %cst_25 : f32 to vector<16x1xf32>
    %cst_26 = arith.constant dense<0xFF800000> : vector<16xf32>
    %69 = vector.multi_reduction <maximumf>, %66, %cst_26 [1] : vector<16x256xf32> to vector<16xf32>
    %70 = vector.shape_cast %69 : vector<16xf32> to vector<16x1xf32>
    %71 = arith.addf %68, %70 : vector<16x1xf32>
    %72 = vector.broadcast %70 : vector<16x1xf32> to vector<16x256xf32>
    %73 = arith.cmpf oeq, %66, %72 : vector<16x256xf32>
    %c256_i32 = arith.constant 256 : i32
    %74 = vector.broadcast %c256_i32 : i32 to vector<16x256xi32>
    %75 = arith.select %73, %67, %74 : vector<16x256xi1>, vector<16x256xi32>
    %cst_27 = arith.constant dense<2147483647> : vector<16xi32>
    %76 = vector.multi_reduction <minsi>, %75, %cst_27 [1] : vector<16x256xi32> to vector<16xi32>
    %77 = vector.shape_cast %76 : vector<16xi32> to vector<16x1xi32>
    %78 = vector.broadcast %77 : vector<16x1xi32> to vector<16x256xi32>
    %79 = arith.cmpi eq, %67, %78 : vector<16x256xi32>
    %cst_28 = arith.constant 0xFF800000 : f32
    %80 = vector.broadcast %cst_28 : f32 to vector<16x256xf32>
    %81 = arith.select %79, %80, %66 : vector<16x256xi1>, vector<16x256xf32>
    %cst_29 = arith.constant dense<0xFF800000> : vector<16xf32>
    %82 = vector.multi_reduction <maximumf>, %81, %cst_29 [1] : vector<16x256xf32> to vector<16xf32>
    %83 = vector.shape_cast %82 : vector<16xf32> to vector<16x1xf32>
    %84 = arith.addf %71, %83 : vector<16x1xf32>
    %85 = vector.extract_strided_slice %84 {offsets = [0, 0], sizes = [8, 1], strides = [1, 1]} : vector<16x1xf32> to vector<8x1xf32>
    %86 = vector.shape_cast %85 : vector<8x1xf32> to vector<1x8x1xf32>
    %cst_30 = arith.constant dense<0.000000e+00> : vector<1xf32>
    %87 = vector.multi_reduction <add>, %86, %cst_30 [1, 2] : vector<1x8x1xf32> to vector<1xf32>
    %88 = vector.shape_cast %87 : vector<1xf32> to vector<1x1x1xf32>
    %89 = vector.extract %88[0, 0, 0] : f32 from vector<1x1x1xf32>
    %90 = vector.extract_strided_slice %84 {offsets = [8, 0], sizes = [8, 1], strides = [1, 1]} : vector<16x1xf32> to vector<8x1xf32>
    %91 = vector.shape_cast %90 : vector<8x1xf32> to vector<1x8x1xf32>
    %cst_31 = arith.constant dense<0.000000e+00> : vector<1xf32>
    %92 = vector.multi_reduction <add>, %91, %cst_31 [1, 2] : vector<1x8x1xf32> to vector<1xf32>
    %93 = vector.shape_cast %92 : vector<1xf32> to vector<1x1x1xf32>
    %94 = vector.extract %93[0, 0, 0] : f32 from vector<1x1x1xf32>
    %95 = tpu.iota {dimensions = array<i32: 1>} : vector<8x128xi32>
    %96 = tpu.iota {dimensions = array<i32: 0>} : vector<8x128xi32>
    %c0_i32 = arith.constant 0 : i32
    %97 = vector.broadcast %c0_i32 : i32 to vector<8x128xi32>
    %98 = arith.cmpi eq, %96, %97 : vector<8x128xi32>
    %c0_i32_32 = arith.constant 0 : i32
    %99 = vector.broadcast %c0_i32_32 : i32 to vector<8x128xi32>
    %100 = arith.cmpi eq, %95, %99 : vector<8x128xi32>
    %101 = arith.andi %98, %100 : vector<8x128xi1>
    %c0_i32_33 = arith.constant 0 : i32
    %102 = vector.broadcast %c0_i32_33 : i32 to vector<8x128xi32>
    %103 = arith.cmpi eq, %96, %102 : vector<8x128xi32>
    %c1_i32 = arith.constant 1 : i32
    %104 = vector.broadcast %c1_i32 : i32 to vector<8x128xi32>
    %105 = arith.cmpi eq, %95, %104 : vector<8x128xi32>
    %106 = arith.andi %103, %105 : vector<8x128xi1>
    %cst_34 = arith.constant 0.000000e+00 : f32
    %107 = vector.broadcast %94 : f32 to vector<8x128xf32>
    %108 = vector.broadcast %cst_34 : f32 to vector<8x128xf32>
    %109 = arith.select %106, %107, %108 : vector<8x128xi1>, vector<8x128xf32>
    %110 = vector.broadcast %89 : f32 to vector<8x128xf32>
    %111 = arith.select %101, %110, %109 : vector<8x128xi1>, vector<8x128xf32>
    %c0_35 = arith.constant 0 : index
    %c0_36 = arith.constant 0 : index
    %c0_37 = arith.constant 0 : index
    %112 = vector.load %arg4[%c0_35, %c0_36, %c0_37] : memref<1x8x128xf32, #tpu.memory_space<vmem>>, vector<1x8x128xf32>
    %113 = vector.shape_cast %112 : vector<1x8x128xf32> to vector<8x128xf32>
    %114 = vector.shape_cast %111 : vector<8x128xf32> to vector<1x8x128xf32>
    tpu.vector_store %arg4[%c0_35, %c0_36, %c0_37], %114 {strides = array<i32>} : memref<1x8x128xf32, #tpu.memory_space<vmem>>, vector<1x8x128xf32>,
    return
  }
  func.func @transform_0(%arg0: i32) -> (i32, i32) {
    %c0_i32 = arith.constant 0 : i32
    %c0_i32_0 = arith.constant 0 : i32
    return %arg0, %c0_i32 : i32, i32
  }
  func.func @transform_1(%arg0: i32) -> (i32, i32) {
    %c1_i32 = arith.constant 1 : i32
    %0 = arith.addi %c1_i32, %arg0 : i32
    %c0_i32 = arith.constant 0 : i32
    %c0_i32_0 = arith.constant 0 : i32
    return %0, %c0_i32 : i32, i32
  }
  func.func @transform_2(%arg0: i32) -> (i32, i32) {
    %c1_i32 = arith.constant 1 : i32
    %0 = arith.addi %c1_i32, %arg0 : i32
    %c0_i32 = arith.constant 0 : i32
    %c0_i32_0 = arith.constant 0 : i32
    return %0, %c0_i32 : i32, i32
  }
  func.func @transform_3(%arg0: i32) -> (i32, i32, i32) {
    %c0_i32 = arith.constant 0 : i32
    %c0_i32_0 = arith.constant 0 : i32
    %c0_i32_1 = arith.constant 0 : i32
    return %arg0, %c0_i32, %c0_i32_0 : i32, i32, i32
  }
}

</mosaic_0001>

<bundles_post_ra>
// kernel: tpu_custom_call.1
= control target key start
LH: loop header
LB: loop body
LE: loop exit
PB: predicated region body
PF: predicated region fallthrough
CT: control target
= control target key end

     0   :  { %8 = vsyncpa [#allocation3], 0  ;;  %s512_s0 = inlined_call_operand.hbm [shape: f32[16,256], index: 0, kind: input, shape index: {}]   ;;  %s513_s1 = inlined_call_operand.hbm [shape: f32[16,256], index: 1, kind: input, shape index: {}]   ;;  %s514_s2 = inlined_call_operand.vmem [shape: s32[16,1], index: 2, kind: input, shape index: {}]   ;;  %s515_s3 = inlined_call_operand.hbm [shape: f32[1,8,128], index: 3, kind: output, shape index: {}]  }
   0x1   :  { %9 = vsyncpa [#allocation6], 0 }
   0x2   :  { %10 = vsyncpa [#allocation4], 0  ;;  %s303_s14 = scalar_lea.hbm %s513_s1, 256  ;;  %s410_s15 = smov [#allocation2]  }
   0x3   :  { %s17_s16 = sshll.u32 %s410_s15, 4  ;;  %s411_s17 = smov [#allocation5]   ;;  %s18_s16 = int_to_ptr.vmem [resolvable:$true] %s17_s16 }
   0x4   :  { %s31_s18 = sshll.u32 %s411_s17, 4  ;;  %s349_s19 = scalar_lea.vmem %s18_s16, 256  ;;  %s32_s18 = int_to_ptr.vmem [resolvable:$true] %s31_s18 }
   0x5   :  { %p350_p0 = scmp.ne.s32.totalorder %s18_s16, %s349_s19  ;;  %p354_p1 = scmp.lt.s32.totalorder %s18_s16, %s18_s16 }
   0x6   :  { %p355_p2 = scmp.lt.s32.totalorder %s349_s19, %s349_s19 }
   0x8   :  { %p356_p3 = por %p355_p2, %p354_p1 }
   0xa   :  { %p357_p4 = pnand %p356_p3, %p350_p0 }
   0xc   :  { %360 = shalt.err (!%p357_p4)
}
   0xd   :  { %20 = dma.hbm_to_vmem [thread:$0]  %s512_s0, 256, %s18_s16, [#allocation3]  }
   0xe   :  { %s371_s22 = scalar_lea.vmem %s32_s18, 256  ;;  %p376_p6 = scmp.lt.s32.totalorder %s32_s18, %s32_s18 }
   0xf   :  { %p372_p5 = scmp.ne.s32.totalorder %s32_s18, %s371_s22  ;;  %p377_p7 = scmp.lt.s32.totalorder %s371_s22, %s371_s22 }
  0x11   :  { %p378_p8 = por %p377_p7, %p376_p6 }
  0x13   :  { %p379_p9 = pnand %p378_p8, %p372_p5 }
  0x15   :  { %382 = shalt.err (!%p379_p9)
}
  0x16   :  { %34 = dma.hbm_to_vmem [thread:$0]  %s303_s14, 256, %s32_s18, [#allocation6]  }
  0x17   :  { %404 = dma.done.wait [#allocation3], 256  }
  0x18   :  { %405 = vsyncadd [#allocation3], 4294967040 }
  0x19   :  { %406 = dma.done.wait [#allocation6], 256  }
  0x1a   :  { %407 = vsyncadd [#allocation6], 4294967040  ;;  %v412_v0 = vmov 0   ;;  %v310_v1 = vld [vmem:[%s514_s2 + $0x8] sm:$0xff]  ;;  %v444_v2 = vld [vmem:[#allocation2] sm:$0xff]  ;;  %s414_s2 = smov [#allocation7]  }
  0x1b   :  { %320 = vset.pattern.permute.xlu0 %v412_v0  ;;  %v446_v3 = vld [vmem:[#allocation2 + $0x8] sm:$0xff]  ;;  %v448_v4 = vld [vmem:[#allocation5] sm:$0xff]  ;;  %v450_v5 = vld [vmem:[#allocation5 + $0x8] sm:$0xff]  ;;  %v65_v6 = vand.u32 2147483647, %v444_v2  ;;  %v73_v36 = vmin.f32 %v444_v2, 0.0 }
  0x1c   :  { %176 = vperm.xlu0 %320, %v310_v1   ;;  %v66_v7 = vand.u32 2147483647, %v446_v3  ;;  %v105_v8 = vand.u32 2147483647, %v448_v4  ;;  %v106_v9 = vand.u32 2147483647, %v450_v5 }
  0x1d   :  { %v67_v10 = vsub.f32 0.0, %v65_v6  ;;  %v74_v37 = vmin.f32 %v446_v3, 0.0  ;;  %vm145_vm1 = vcmp.ge.f32.partialorder %v448_v4, 0.0  ;;  %vm146_vm3 = vcmp.ge.f32.partialorder %v450_v5, 0.0  ;;  %s293_s24 = sshll.u32 %s414_s2, 4  ;;  %s294_s24 = int_to_ptr.vmem [resolvable:$true] %s293_s24 }
  0x1e   :  { %v68_v11 = vsub.f32 0.0, %v66_v7  ;;  %v107_v12 = vsub.f32 0.0, %v105_v8  ;;  %v108_v13 = vsub.f32 0.0, %v106_v9  ;;  %v113_v50 = vmin.f32 %v448_v4, 0.0  ;;  %s384_s26 = scalar_lea.vmem %s294_s24, 128  ;;  %p389_p11 = scmp.lt.s32.totalorder %s294_s24, %s294_s24 }
  0x1f   :  { %v69_v14 = vmul.f32 1.442695, %v67_v10  ;;  %v114_v51 = vmin.f32 %v450_v5, 0.0  ;;  %p385_p10 = scmp.ne.s32.totalorder %s294_s24, %s384_s26  ;;  %p390_p12 = scmp.lt.s32.totalorder %s384_s26, %s384_s26 }
  0x20   :  { %v71_v15 = vmul.f32 1.442695, %v68_v11  ;;  %v109_v16 = vmul.f32 1.442695, %v107_v12  ;;  %v111_v17 = vmul.f32 1.442695, %v108_v13 }
  0x21   :  { %321 = vpow2.f32 %v69_v14  ;;  %p391_p13 = por %p390_p12, %p389_p11 }
  0x22   :  { %323 = vpow2.f32 %v71_v15 }
  0x23   :  { %325 = vpow2.f32 %v109_v16  ;;  %p392_p0 = pnand %p391_p13, %p385_p10 }
  0x24   :  { %327 = vpow2.f32 %v111_v17 }
  0x2e   :  { %v322_v18 = vpop.eup %321 }
  0x2f   :  { %v324_v19 = vpop.eup %323  ;;  %v75_v20 = vadd.f32 1.0, %v322_v18  ;;  %v78_v26 = vmul.f32 -0.5, %v322_v18  ;;  %v81_v31 = vand.u32 2147483647, %v322_v18 }
  0x30   :  { %v326_v21 = vpop.eup %325  ;;  %v84_v22 = vadd.f32 1.0, %v324_v19  ;;  %v87_v27 = vmul.f32 -0.5, %v324_v19  ;;  %v90_v33 = vand.u32 2147483647, %v324_v19 }
  0x31   :  { %v328_v23 = vpop.eup %327  ;;  %329 = vlog2.f32 %v75_v20  ;;  %v115_v24 = vadd.f32 1.0, %v326_v21  ;;  %v118_v28 = vmul.f32 -0.5, %v326_v21  ;;  %v79_v29 = vadd.f32 1.0, %v78_v26 }
  0x32   :  { %331 = vlog2.f32 %v84_v22  ;;  %v124_v25 = vadd.f32 1.0, %v328_v23  ;;  %v127_v30 = vmul.f32 -0.5, %v328_v23  ;;  %v88_v32 = vadd.f32 1.0, %v87_v27 }
  0x33   :  { %333 = vlog2.f32 %v115_v24  ;;  %v119_v34 = vadd.f32 1.0, %v118_v28  ;;  %v121_v35 = vand.u32 2147483647, %v326_v21  ;;  %v80_v38 = vmul.f32 %v322_v18, %v79_v29 }
  0x34   :  { %335 = vlog2.f32 %v124_v25  ;;  %v128_v39 = vadd.f32 1.0, %v127_v30  ;;  %vm458_vm0 = vcmp.lt.f32.partialorder %v81_v31, 0.0004427343  ;;  %v89_v42 = vmul.f32 %v324_v19, %v88_v32 }
  0x35   :  { %337 = vrcp.f32 %v115_v24  ;;  %v130_v43 = vand.u32 2147483647, %v328_v23  ;;  %vm463_vm2 = vcmp.lt.f32.partialorder %v90_v33, 0.0004427343  ;;  %v120_v47 = vmul.f32 %v326_v21, %v119_v34 }
  0x36   :  { %339 = vrcp.f32 %v124_v25  ;;  %vm470_vm4 = vcmp.lt.f32.partialorder %v121_v35, 0.0004427343  ;;  %v129_v55 = vmul.f32 %v328_v23, %v128_v39  ;;  %v147_v56 = vsel %vm145_vm1, 1.0, %v326_v21 }
  0x37   :  { %vm478_vm5 = vcmp.lt.f32.partialorder %v130_v43, 0.0004427343  ;;  %v148_v61 = vsel %vm146_vm3, 1.0, %v328_v23 }
  0x3e   :  { %v330_v40 = vpop.eup %329 }
  0x3f   :  { %v332_v44 = vpop.eup %331  ;;  %v77_v45 = vmul.f32 0.6931472, %v330_v40 }
  0x40   :  { %v334_v48 = vpop.eup %333  ;;  %v86_v49 = vmul.f32 0.6931472, %v332_v44 }
  0x41   :  { %v83_v53 = vsel %vm458_vm0, %v80_v38, %v77_v45  ;;  %v117_v54 = vmul.f32 0.6931472, %v334_v48  ;;  %v336_v57 = vpop.eup %335 }
  0x42   :  { %v92_v58 = vsel %vm463_vm2, %v89_v42, %v86_v49  ;;  %v93_v59 = vsub.f32 %v73_v36, %v83_v53  ;;  %v338_v62 = vpop.eup %337  ;;  %v126_v1 = vmul.f32 0.6931472, %v336_v57  ;;  %v413_v53 = vmov 1e-06  }
  0x43   :  { %v94_v63 = vsub.f32 %v74_v37, %v92_v58  ;;  %v123_v0 = vsel %vm470_vm4, %v120_v47, %v117_v54  ;;  %v340_v6 = vpop.eup %339  ;;  %v152_v10 = vmul.f32 %v338_v62, %v147_v56  ;;  %v171_v47 = vlaneseq }
  0x44   :  { %v95_v7 = vmax.f32 %v93_v59, -13.815511  ;;  %v99_v8 = vsub.f32 %v93_v59, %v444_v2  ;;  %v133_v9 = vsub.f32 %v113_v50, %v123_v0  ;;  %v132_v13 = vsel %vm478_vm5, %v129_v55, %v126_v1 }
  0x45   :  { %v96_v11 = vmax.f32 %v94_v63, -13.815511  ;;  %v100_v12 = vsub.f32 %v94_v63, %v446_v3  ;;  %v154_v14 = vmul.f32 %v340_v6, %v148_v61  ;;  %v134_v17 = vsub.f32 %v114_v51, %v132_v13 }
  0x46   :  { %v97_v15 = vmin.f32 %v95_v7, -1.0000005e-06  ;;  %v101_v16 = vmax.f32 %v99_v8, -13.815511  ;;  %v135_v18 = vmax.f32 %v133_v9, -13.815511  ;;  %v139_v21 = vsub.f32 %v133_v9, %v448_v4 }
  0x47   :  { %v98_v19 = vmin.f32 %v96_v11, -1.0000005e-06  ;;  %v102_v20 = vmax.f32 %v100_v12, -13.815511  ;;  %v155_v22 = vmax.f32 %v152_v10, 1e-06  ;;  %v140_v25 = vsub.f32 %v134_v17, %v450_v5 }
  0x48   :  { %v103_v23 = vmin.f32 %v101_v16, -1.0000005e-06  ;;  %v136_v2 = vmax.f32 %v134_v17, -13.815511  ;;  %v137_v24 = vmin.f32 %v135_v18, -1.0000005e-06 }
  0x49   :  { %v104_v26 = vmin.f32 %v102_v20, -1.0000005e-06  ;;  %v141_v3 = vmax.f32 %v139_v21, -13.815511  ;;  %v156_v27 = vmax.f32 %v154_v14, 1e-06 }
  0x4a   :  { %v138_v28 = vmin.f32 %v136_v2, -1.0000005e-06  ;;  %v142_v29 = vmax.f32 %v140_v25, -13.815511  ;;  %v157_v30 = vmin.f32 %v155_v22, 0.999999  ;;  %v159_v31 = vsub.f32 %v137_v24, %v97_v15 }
  0x4b   :  { %v143_v32 = vmin.f32 %v141_v3, -1.0000005e-06  ;;  %v158_v33 = vmin.f32 %v156_v27, 0.999999  ;;  %v184_v34 = vsub.f32 %v97_v15, %v103_v23  ;;  %v185_v35 = vsub.f32 %v98_v19, %v104_v26 }
  0x4c   :  { %v144_v36 = vmin.f32 %v142_v29, -1.0000005e-06  ;;  %v160_v37 = vsub.f32 %v138_v28, %v98_v19  ;;  %v163_v4 = vsub.f32 1.0, %v157_v30  ;;  %v161_v38 = vmul.f32 %v159_v31, %v157_v30 }
  0x4d   :  { %v164_v39 = vsub.f32 1.0, %v158_v33  ;;  %v165_v40 = vsub.f32 %v143_v32, %v103_v23  ;;  %v491_v48 = vand.u32 127, %v171_v47  ;;  %v182_v51 = vsub.f32 -1.481551e-05, %v103_v23 }
  0x4e   :  { %v162_v41 = vmul.f32 %v160_v37, %v158_v33  ;;  %v166_v42 = vsub.f32 %v144_v36, %v104_v26  ;;  %v183_v52 = vsub.f32 -1.481551e-05, %v104_v26  ;;  %vm254_vm4 = vcmask 7168  }
  0x4f   :  { %v167_v5 = vmul.f32 %v165_v40, %v163_v4  ;;  %v494_v49 = vadd.s32 128, %v491_v48 }
  0x50   :  { %v168_v43 = vmul.f32 %v166_v42, %v164_v39 }
  0x51   :  { %v169_v44 = vadd.f32 %v167_v5, %v161_v38 }
  0x52   :  { %v170_v45 = vadd.f32 %v168_v43, %v162_v41 }
  0x54   :  { %v190_v46 = vmax.f32 %v169_v44, %v170_v45 }
  0x56   :  { %191 = vmax.xlane.f32.xlu0 %v190_v46 }
  0x97   :  { %v177_v50 = vpop.permute.xlu0 %176 }
  0x98   :  { %vm178_vm6 = vcmp.eq.s32.totalorder %v491_v48, %v177_v50  ;;  %vm179_vm7 = vcmp.eq.s32.totalorder %v494_v49, %v177_v50 }
  0x99   :  { %v180_v54 = vsel %vm178_vm6, 0.999999, %v413_v53  ;;  %v181_v55 = vsel %vm179_vm7, 0.999999, %v413_v53  ;;  %vm280_vm6 = vcmp.eq.s32.totalorder %v491_v48, 1  ;;  %vm278_vm7 = vcmp.eq.s32.totalorder %v491_v48, 0 }
  0x9a   :  { %v186_v56 = vmul.f32 %v184_v34, %v180_v54  ;;  %v187_v57 = vmul.f32 %v185_v35, %v181_v55  ;;  %v276_v55 = vshrl.u32 %v171_v47, 7 }
  0x9c   :  { %v188_v58 = vsub.f32 %v182_v51, %v186_v56  ;;  %v189_v59 = vsub.f32 %v183_v52, %v187_v57  ;;  %vm277_vm5 = vcmp.eq.s32.totalorder %v276_v55, 0 }
  0x9e   :  { %v193_v60 = vmax.f32 %v188_v58, %v189_v59 }
  0xa0   :  { %194 = vmax.xlane.f32.xlu1 %v193_v60 }
  0xdf   :  { %v192_v61 = vpop.xlane.xlu0 %191 }
  0xe0   :  { %vm198_vm8 = vcmp.eq.f32.partialorder %v169_v44, %v192_v61  ;;  %vm199_vm9 = vcmp.eq.f32.partialorder %v170_v45, %v192_v61 }
  0xe1   :  { %v202_v62 = vsel %vm198_vm8, %v491_v48, 256  ;;  %v203_v63 = vsel %vm199_vm9, %v494_v49, 256  ;;  %vm281_vm8 = vmand %vm277_vm5, %vm280_vm6 }
  0xe2   :  { %vm206_vm10 = vcmp.lt.s32.totalorder %v202_v62, %v203_v63  ;;  %vm279_vm9 = vmand %vm277_vm5, %vm278_vm7 }
  0xe3   :  { %v207_v0 = vsel %vm206_vm10, %v202_v62, %v203_v63 }
  0xe4   :  { %v209_v1 = vshra.s32 %v207_v0, 16  ;;  %v208_v13 = vand.u32 65535, %v207_v0 }
  0xe6   :  { %v211_v6 = vcvt.s32.f32 %v209_v1  ;;  %v210_v15 = vcvt.s32.f32 %v208_v13 }
  0xe8   :  { %212 = vmin.xlane.f32.xlu1 %v211_v6 }
 0x129   :  { %v195_v7 = vpop.xlane.xlu1 %194 }
 0x12a   :  { %vm200_vm11 = vcmp.eq.f32.partialorder %v188_v58, %v195_v7  ;;  %vm201_vm12 = vcmp.eq.f32.partialorder %v189_v59, %v195_v7 }
 0x12b   :  { %v204_v8 = vsel %vm200_vm11, %v491_v48, 256  ;;  %v205_v9 = vsel %vm201_vm12, %v494_v49, 256 }
 0x12c   :  { %vm222_vm13 = vcmp.lt.s32.totalorder %v204_v8, %v205_v9 }
 0x12d   :  { %v223_v10 = vsel %vm222_vm13, %v204_v8, %v205_v9 }
 0x12e   :  { %v225_v11 = vshra.s32 %v223_v10, 16  ;;  %v224_v17 = vand.u32 65535, %v223_v10 }
 0x130   :  { %v227_v12 = vcvt.s32.f32 %v225_v11  ;;  %v226_v19 = vcvt.s32.f32 %v224_v17 }
 0x132   :  { %228 = vmin.xlane.f32.xlu1 %v227_v12 }
 0x171   :  { %v213_v14 = vpop.xlane.xlu1 %212 }
 0x172   :  { %vm214_vm14 = vcmp.eq.f32.partialorder %v211_v6, %v213_v14  ;;  %v219_v21 = vcvt.f32.s32 %v213_v14 }
 0x173   :  { %v215_v16 = vsel %vm214_vm14, %v210_v15, inf }
 0x174   :  { %216 = vmin.xlane.f32.xlu1 %v215_v16  ;;  %v220_v23 = vshll.u32 %v219_v21, 16 }
 0x1bb   :  { %v229_v18 = vpop.xlane.xlu1 %228 }
 0x1bc   :  { %vm230_vm15 = vcmp.eq.f32.partialorder %v227_v12, %v229_v18  ;;  %v235_v27 = vcvt.f32.s32 %v229_v18 }
 0x1bd   :  { %v231_v20 = vsel %vm230_vm15, %v226_v19, inf }
 0x1be   :  { %232 = vmin.xlane.f32.xlu1 %v231_v20  ;;  %v236_v29 = vshll.u32 %v235_v27, 16 }
 0x1fd   :  { %v217_v22 = vpop.xlane.xlu1 %216 }
 0x1fe   :  { %v218_v2 = vcvt.f32.s32 %v217_v22 }
 0x200   :  { %v221_v24 = vadd.s32 %v220_v23, %v218_v2 }
 0x202   :  { %vm238_vm0 = vcmp.eq.s32.totalorder %v491_v48, %v221_v24  ;;  %vm239_vm1 = vcmp.eq.s32.totalorder %v494_v49, %v221_v24 }
 0x203   :  { %v242_v25 = vsel %vm238_vm0, -inf, %v169_v44  ;;  %v243_v26 = vsel %vm239_vm1, -inf, %v170_v45 }
 0x204   :  { %v246_v3 = vmax.f32 %v242_v25, %v243_v26 }
 0x206   :  { %247 = vmax.xlane.f32.xlu1 %v246_v3 }
 0x247   :  { %v233_v28 = vpop.xlane.xlu1 %232 }
 0x248   :  { %v234_v30 = vcvt.f32.s32 %v233_v28 }
 0x24a   :  { %v237_v31 = vadd.s32 %v236_v29, %v234_v30 }
 0x24c   :  { %vm240_vm2 = vcmp.eq.s32.totalorder %v491_v48, %v237_v31  ;;  %vm241_vm3 = vcmp.eq.s32.totalorder %v494_v49, %v237_v31 }
 0x24d   :  { %v244_v32 = vsel %vm240_vm2, -inf, %v188_v58  ;;  %v245_v33 = vsel %vm241_vm3, -inf, %v189_v59 }
 0x24e   :  { %v249_v34 = vmax.f32 %v244_v32, %v245_v33 }
 0x250   :  { %250 = vmax.xlane.f32.xlu1 %v249_v34 }
 0x28f   :  { %v248_v35 = vpop.xlane.xlu1 %247 }
 0x290   :  { %v252_v36 = vadd.f32 %v248_v35, %v192_v61 }
 0x292   :  { %v255_v37 = vsel %vm254_vm4, %v252_v36, 0.0 }
 0x293   :  { %256 = vadd.xlane.f32.xlu1 %v255_v37 }
 0x2d9   :  { %v251_v4 = vpop.xlane.xlu1 %250 }
 0x2da   :  { %v253_v38 = vadd.f32 %v251_v4, %v195_v7 }
 0x2dc   :  { %v265_v39 = vsel %vm254_vm4, %v253_v38, 0.0 }
 0x2dd   :  { %266 = vadd.xlane.f32.xlu1 %v265_v39 }
 0x31c   :  { %v257_v40 = vpop.xlane.xlu1 %256 }
 0x31d   :  { %v258_v41 = vrot.slane %v257_v40, 4 }
 0x31f   :  { %v259_v42 = vadd.f32 %v258_v41, %v257_v40 }
 0x321   :  { %v260_v5 = vrot.slane %v259_v42, 2 }
 0x323   :  { %v261_v43 = vadd.f32 %v260_v5, %v259_v42 }
 0x325   :  { %v262_v44 = vrot.slane %v261_v43, 1 }
 0x327   :  { %v263_v45 = vadd.f32 %v262_v44, %v261_v43 }
 0x329   :  { %311 = vpush %v263_v45 }
 0x35a   :  { %s312_s0 = spop %311 }
 0x35b   :  { %v284_v57 = vstv %s312_s0 }
 0x366   :  { %v267_v46 = vpop.xlane.xlu1 %266 }
 0x367   :  { %v268_v49 = vrot.slane %v267_v46, 4 }
 0x369   :  { %v269_v50 = vadd.f32 %v268_v49, %v267_v46 }
 0x36b   :  { %v270_v51 = vrot.slane %v269_v50, 2 }
 0x36d   :  { %v271_v52 = vadd.f32 %v270_v51, %v269_v50 }
 0x36f   :  { %v272_v53 = vrot.slane %v271_v52, 1 }
 0x371   :  { %v273_v54 = vadd.f32 %v272_v53, %v271_v52 }
 0x373   :  { %313 = vpush %v273_v54 }
 0x3a4   :  { %s314_s25 = spop %313 }
 0x3a5   :  { %v282_v56 = vstv %s314_s25 }
 0x3a6   :  { %v283_v58 = vsel %vm281_vm8, %v282_v56, 0.0 }
 0x3a7   :  { %v285_v59 = vsel %vm279_vm9, %v284_v57, %v283_v58 }
 0x3a8   :  { %286 = vst [vmem:[#allocation7] sm:$0xff] %v285_v59 }
 0x3a9   :  { %395 = shalt.err (!%p392_p0)
}
 0x3aa   :  { %296 = dma.vmem_to_hbm [thread:$0]  %s294_s24, 128, %s515_s3, [#allocation4]  }
 0x3ab   :  { %408 = dma.done.wait [#allocation4], 128  }
 0x3ac   :  { %409 = vsyncadd [#allocation4], 4294967168 }
 0x3ad   :  { %300 = vsyncpa [#allocation3], 1 }
 0x3ae   :  { %301 = vsyncpa [#allocation6], 1 }
 0x3af   :  { %302 = vsyncpa [#allocation4], 1 }

</bundles_post_ra>
